<compile_context>
chip_gen: v6e
topology: v6e:2x2x1
jax: 0.10.0
libtpu: 0.0.40
codegen_flags: <defaults>
</compile_context>

<pallas_src>
import functools

import numpy as np
import jax
import jax.numpy as jnp
from jax.experimental import pallas as pl
from jax.experimental.pallas import tpu as pltpu

# ----------------------------- configuration ------------------------------
HIDDEN = 32      # bert hidden size
D_IN = 16        # decoder.in_dim == bert_encoder output
D_HID = 16       # prosody predictor hidden size (dim of `d`)
D_TE = 16        # text_encoder output channels (asr channels)
STYLE_DIM = 16   # half of ref_s (reference hard-codes 128)
MAX_DUR = 8      # duration_proj bins (reference uses 50)
HOP = 4          # synthetic decoder samples-per-frame
VOCAB = 64
MAX_POS = 64
LANES = 128      # lane-dense output slab width
FPB = LANES // HOP          # frames packed per decode output row (32)
assert FPB * HOP == LANES

ENC_MAX_TILE_ROWS = 256     # row tile for the encode kernel (multiple of 8)
DEC_MAX_TILE_ROWS = 256     # row tile for the decode kernel (multiple of 8)
VMEM_LIMIT = 32 * 1024 * 1024   # safe on v5e/v6e (128 MiB) and v7x (64 MiB)


def _round_up(x, m):
    return ((x + m - 1) // m) * m


def _pick_tile(rows, max_tile):
    """Row tile (multiple of 8) and padded row count (multiple of the tile)."""
    tile = min(max_tile, _round_up(max(rows, 1), 8))
    return tile, _round_up(rows, tile)


# --------------------------- fused encode kernel ---------------------------
def _encode_kernel(emb_ref, te_ref,
                   w1_ref, b1_ref, w2be_ref, b2be_ref,
                   wdt_ref, bdt_ref,
                   lw_ref, lb_ref, dw_ref, db_ref,
                   out_ref, *, inv_speed):
    f32, bf16 = jnp.float32, jnp.bfloat16
    emb = emb_ref[...]                                          # bf16 [TR, HIDDEN]
    # synthetic KokoroAlbert: embeddings already summed/masked, 2-layer MLP
    h = jnp.dot(emb, w1_ref[...], preferred_element_type=f32) + b1_ref[...]
    h = jax.nn.gelu(h, approximate=True)
    # bert MLP layer-2 and bert_encoder folded into one weight (no nonlinearity
    # between them) -> one MXU pass, one weight DMA.
    d_en = (jnp.dot(h.astype(bf16), w2be_ref[...], preferred_element_type=f32)
            + b2be_ref[...])                                    # [TR, D_IN]
    # predictor.text_encoder + text_encoder fused as ONE block-diagonal matmul
    # on [d_en | te]; style projection is pre-folded into bdt.  Result is
    # lane-contiguous: d at lanes 0..15, t_en at lanes 16..31.
    xcat = jnp.concatenate([d_en, te_ref[...]], axis=-1).astype(bf16)   # [TR, 32]
    dt = jnp.tanh(jnp.dot(xcat, wdt_ref[...], preferred_element_type=f32)
                  + bdt_ref[...])                               # f32 [TR, 32]
    # TODO(synk): predictor.lstm (nn.LSTM recurrence) approximated by a
    # per-step linear projection; no sequential hidden state.
    x = jnp.tanh(jnp.dot(dt[:, :D_HID].astype(bf16), lw_ref[...],
                         preferred_element_type=f32) + lb_ref[...])
    logits = jnp.dot(x.astype(bf16), dw_ref[...], preferred_element_type=f32) + db_ref[...]
    duration = jnp.sum(jax.nn.sigmoid(logits), axis=-1, keepdims=True) * inv_speed
    rows = dt.shape[0]
    # single 128-lane store: [d | t_en | duration broadcast over lanes 32..127]
    out_ref[...] = jnp.concatenate(
        [dt, jnp.broadcast_to(duration, (rows, LANES - (D_HID + D_TE)))], axis=-1)


def encode_batch(w, bdt, emb_rows, te_rows, inv_speed):
    """Row-tiled pallas_call over all sequences' token rows -> [R, 128] slab."""
    R = emb_rows.shape[0]
    TR, R_pad = _pick_tile(R, ENC_MAX_TILE_ROWS)
    if R_pad != R:
        emb_rows = jnp.pad(emb_rows, ((0, R_pad - R), (0, 0)))
        te_rows = jnp.pad(te_rows, ((0, R_pad - R), (0, 0)))
    consts = (w["bert_w1"], w["bert_b1"], w["w2be"], w["b2be"],
              w["W_dt"], bdt, w["lstm_w"], w["lstm_b"], w["dur_w"], w["dur_b"])
    const_specs = [pl.BlockSpec(c.shape, lambda i: (0, 0)) for c in consts]
    slab = pl.pallas_call(
        functools.partial(_encode_kernel, inv_speed=inv_speed),
        out_shape=jax.ShapeDtypeStruct((R_pad, LANES), jnp.float32),
        grid=(R_pad // TR,),
        in_specs=[pl.BlockSpec((TR, HIDDEN), lambda i: (i, 0)),
                  pl.BlockSpec((TR, D_TE), lambda i: (i, 0))] + const_specs,
        out_specs=pl.BlockSpec((TR, LANES), lambda i: (i, 0)),
        compiler_params=pltpu.CompilerParams(
            dimension_semantics=("parallel",),
            vmem_limit_bytes=VMEM_LIMIT),
    )(emb_rows, te_rows, *consts)
    return slab[:R]


# ------------------------ fused f0_n_train + decoder ------------------------
def _decode_kernel(en_ref, asr_ref, wf_ref, fb_ref, wa_ref, wc_ref, db_ref, out_ref):
    f32, bf16 = jnp.float32, jnp.bfloat16
    # predictor.f0_n_train (synthetic): frame-wise linear on [en | s_prd] with
    # the style term pre-folded into fb; FPB frames per row via block-diag W.
    # TODO(synk): the reference's repeat(2)-then-slice of f0/n around the real
    # conv decoder is dropped; it is value-identical only for this per-frame
    # linear stand-in.
    fn = jnp.dot(en_ref[...], wf_ref[...], preferred_element_type=f32) + fb_ref[...]
    # decoder (synthetic iSTFT stand-in): per-frame linear -> HOP samples;
    # 32 frames packed per 128-lane output row -> every stored lane is audio.
    audio = jnp.tanh(
        jnp.dot(asr_ref[...], wa_ref[...], preferred_element_type=f32)
        + jnp.dot(fn.astype(bf16), wc_ref[...], preferred_element_type=f32)
        + db_ref[...])                                          # [TR, 128]
    out_ref[...] = audio


def decode_batch(w, f0b_t, dcb_t, en_p, asr_p):
    """Row-tiled pallas_call over packed frame blocks -> [RB, 128] audio."""
    RB = en_p.shape[0]
    TR, RB_pad = _pick_tile(RB, DEC_MAX_TILE_ROWS)
    if RB_pad != RB:
        en_p = jnp.pad(en_p, ((0, RB_pad - RB), (0, 0)))
        asr_p = jnp.pad(asr_p, ((0, RB_pad - RB), (0, 0)))
    consts = (w["Wf_bd"], f0b_t, w["Wa_bd"], w["Wc_bd"], dcb_t)
    const_specs = [pl.BlockSpec(c.shape, lambda i: (0, 0)) for c in consts]
    out = pl.pallas_call(
        _decode_kernel,
        out_shape=jax.ShapeDtypeStruct((RB_pad, LANES), jnp.float32),
        grid=(RB_pad // TR,),
        in_specs=[pl.BlockSpec((TR, FPB * D_HID), lambda i: (i, 0)),
                  pl.BlockSpec((TR, FPB * D_TE), lambda i: (i, 0))] + const_specs,
        out_specs=pl.BlockSpec((TR, LANES), lambda i: (i, 0)),
        compiler_params=pltpu.CompilerParams(
            dimension_semantics=("parallel",),
            vmem_limit_bytes=VMEM_LIMIT),
    )(en_p, asr_p, *consts)
    return out[:RB]


# ---------------------------- jitted device path ----------------------------
@functools.partial(jax.jit, static_argnames=("speed", "max_frames"))
def _kokoro_device(w, tokens, lengths, ref_s, *, speed, max_frames):
    NB, T = tokens.shape
    ref_s = ref_s.astype(jnp.float32)
    s_prd = ref_s[:, STYLE_DIM:]        # ref_s[:, 128:] in the reference
    s_dec = ref_s[:, :STYLE_DIM]        # ref_s[:, :128] in the reference

    # row-invariant style projections hoisted out of the kernels, folded into
    # the biases (tiny [1, STYLE_DIM] matmuls in XLA).
    bdt = jnp.concatenate(
        [w["pt_b"] + jnp.dot(s_prd, w["pt_ws"]), w["te_b"]], axis=-1)     # [1, 32]
    f0b_t = jnp.tile(w["f0n_b"] + jnp.dot(s_prd, w["f0n_ws"]), (1, FPB))  # [1, 64]
    dcb_t = jnp.tile(w["dec_b"] + jnp.dot(s_dec, w["dec_ws"]), (1, FPB))  # [1, 128]

    valid = jnp.arange(T)[None, :] < lengths[:, None]                     # [NB, T]
    mask_f = valid.astype(jnp.float32)

    # embedding lookups (tiny XLA gathers), rows layout [NB*T, C]
    emb = (w["tok_emb"][tokens] + w["pos_emb"][:T][None]) * mask_f[..., None]
    te_e = w["te_emb"][tokens]
    slab = encode_batch(w, bdt,
                        emb.reshape(NB * T, HIDDEN).astype(jnp.bfloat16),
                        te_e.reshape(NB * T, D_TE).astype(jnp.float32),
                        1.0 / float(speed))                               # [NB*T, 128]

    d_rows = slab[:, :D_HID].reshape(NB, T, D_HID)
    t_en_rows = slab[:, D_HID:D_HID + D_TE].reshape(NB, T, D_TE)
    duration = slab[:, D_HID + D_TE].reshape(NB, T)

    # pred_dur = round(duration).clamp(min=1); padded tokens contribute 0 frames
    pred_dur = jnp.where(valid, jnp.maximum(jnp.round(duration), 1.0), 0.0)
    pred_dur = pred_dur.astype(jnp.int32)
    cum = jnp.cumsum(pred_dur, axis=-1)                                   # [NB, T]
    total_frames = cum[:, -1]                                             # [NB]

    # pred_aln_trg is a one-hot-per-frame selection matrix -> row gather.
    # TODO(synk): could be fused into the decode pallas_call via scalar-prefetch
    # gather of slab rows instead of materialising en_g / asr_g here.
    frames = jnp.arange(max_frames, dtype=jnp.int32)                      # [F]
    tok_idx = jnp.sum((cum[:, None, :] <= frames[None, :, None]).astype(jnp.int32),
                      axis=-1)                                            # [NB, F]
    tok_idx = jnp.minimum(tok_idx, T - 1)
    en_g = jnp.take_along_axis(
        d_rows, jnp.broadcast_to(tok_idx[..., None], (NB, max_frames, D_HID)), axis=1)
    asr_g = jnp.take_along_axis(
        t_en_rows, jnp.broadcast_to(tok_idx[..., None], (NB, max_frames, D_TE)), axis=1)

    # pack FPB frames per row (free row-major reshape) for the lane-dense decode
    RB = (NB * max_frames) // FPB
    en_p = en_g.reshape(RB, FPB * D_HID).astype(jnp.bfloat16)
    asr_p = asr_g.reshape(RB, FPB * D_TE).astype(jnp.bfloat16)

    audio_packed = decode_batch(w, f0b_t, dcb_t, en_p, asr_p)             # [RB, 128]
    audio = audio_packed.reshape(NB, max_frames * HOP)
    return audio, total_frames


def kokoro_forward(weights, tokens_list, ref_s, speed=1.0):
    """Mirror of KokoroModel.forward with STYLE_DIM in place of the 128 split."""
    NB = len(tokens_list)
    lengths = np.array([len(t) + 2 for t in tokens_list], dtype=np.int32)
    T = int(lengths.max())
    toks = np.zeros((NB, T), dtype=np.int32)            # [0, *tokens, 0], right-pad 0
    for b, t in enumerate(tokens_list):
        toks[b, 1:1 + len(t)] = np.asarray(t, dtype=np.int32)
    # static frame bound: per-token duration <= ceil(MAX_DUR / speed); rounded
    # up to a multiple of FPB so frame packing is exact.
    max_per_tok = int(np.ceil(MAX_DUR / float(speed)))
    max_frames = int(_round_up(T * max_per_tok, FPB))

    audio, total_frames = _kokoro_device(
        weights, jnp.asarray(toks), jnp.asarray(lengths), ref_s,
        speed=float(speed), max_frames=max_frames)

    # single host sync at the very end (all device work already enqueued)
    frames_np = np.asarray(jax.device_get(total_frames))
    return [audio[b, : int(frames_np[b]) * HOP][None] for b in range(NB)]


# ------------------------------ parameters ---------------------------------
def init_params(key):
    def dense(k, shape, scale=0.05):
        return scale * jax.random.normal(k, shape, dtype=jnp.float32)

    ks = jax.random.split(key, 12)
    return dict(
        tok_emb=dense(ks[0], (VOCAB, HIDDEN)),
        pos_emb=dense(ks[1], (MAX_POS, HIDDEN)),
        bert_w1=dense(ks[2], (HIDDEN, HIDDEN)), bert_b1=jnp.zeros((HIDDEN,)),
        bert_w2=dense(ks[3], (HIDDEN, HIDDEN)), bert_b2=jnp.zeros((HIDDEN,)),
        be_w=dense(ks[4], (HIDDEN, D_IN)), be_b=jnp.zeros((D_IN,)),
        pt_w=dense(ks[5], (D_IN + STYLE_DIM, D_HID)), pt_b=jnp.zeros((D_HID,)),
        lstm_w=dense(ks[6], (D_HID, D_HID)), lstm_b=jnp.zeros((D_HID,)),
        dur_w=dense(ks[7], (D_HID, MAX_DUR)), dur_b=jnp.zeros((MAX_DUR,)),
        f0n_w=dense(ks[8], (D_HID + STYLE_DIM, 2)), f0n_b=jnp.zeros((2,)),
        te_emb=dense(ks[9], (VOCAB, D_TE)),
        te_w=dense(ks[10], (D_TE, D_TE)), te_b=jnp.zeros((D_TE,)),
        dec_w=dense(ks[11], (D_TE + 2 + STYLE_DIM, HOP)), dec_b=jnp.zeros((HOP,)),
    )


def _block_diag_n(w, n):
    w = np.asarray(jax.device_get(w), dtype=np.float32)
    k, m = w.shape
    out = np.zeros((n * k, n * m), dtype=np.float32)
    for j in range(n):
        out[j * k:(j + 1) * k, j * m:(j + 1) * m] = w
    return jnp.asarray(out)


def prepare_weights(params):
    """Fold / pack parameters once: bf16 weights, f32 biases, block-diag slabs."""
    bf16, f32 = jnp.bfloat16, jnp.float32
    ptx = params["pt_w"][:D_IN]                   # [D_IN, D_HID]
    pts = params["pt_w"][D_IN:]                   # [STYLE, D_HID]
    # block-diag [d_en | te] -> [d | t_en] weight (lane-contiguous output)
    W_dt = jnp.zeros((D_IN + D_TE, D_HID + D_TE), f32)
    W_dt = W_dt.at[:D_IN, :D_HID].set(ptx).at[D_IN:, D_HID:].set(params["te_w"])
    # fold bert layer-2 with bert_encoder (no nonlinearity between them)
    w2be = jnp.dot(params["bert_w2"], params["be_w"])
    b2be = (jnp.dot(params["bert_b2"].reshape(1, -1), params["be_w"])
            + params["be_b"].reshape(1, -1))
    f0e, f0s = params["f0n_w"][:D_HID], params["f0n_w"][D_HID:]
    dca = params["dec_w"][:D_TE]
    dcf = params["dec_w"][D_TE:D_TE + 2]
    dcs = params["dec_w"][D_TE + 2:]
    return dict(
        tok_emb=params["tok_emb"], pos_emb=params["pos_emb"], te_emb=params["te_emb"],
        bert_w1=params["bert_w1"].astype(bf16),
        bert_b1=params["bert_b1"].reshape(1, -1).astype(f32),
        w2be=w2be.astype(bf16), b2be=b2be.astype(f32),
        W_dt=W_dt.astype(bf16),
        pt_ws=pts.astype(f32), pt_b=params["pt_b"].reshape(1, -1).astype(f32),
        te_b=params["te_b"].reshape(1, -1).astype(f32),
        lstm_w=params["lstm_w"].astype(bf16),
        lstm_b=params["lstm_b"].reshape(1, -1).astype(f32),
        dur_w=params["dur_w"].astype(bf16),
        dur_b=params["dur_b"].reshape(1, -1).astype(f32),
        f0n_ws=f0s.astype(f32), f0n_b=params["f0n_b"].reshape(1, -1).astype(f32),
        dec_ws=dcs.astype(f32), dec_b=params["dec_b"].reshape(1, -1).astype(f32),
        # per-frame decode weights replicated block-diagonally: FPB frames/row
        Wf_bd=_block_diag_n(f0e, FPB).astype(bf16),   # [FPB*D_HID, FPB*2]
        Wa_bd=_block_diag_n(dca, FPB).astype(bf16),   # [FPB*D_TE, FPB*HOP]=[512,128]
        Wc_bd=_block_diag_n(dcf, FPB).astype(bf16),   # [FPB*2, FPB*HOP]=[64,128]
    )


# --------------------------------- main -------------------------------------
if __name__ == "__main__":
    key = jax.random.PRNGKey(0)
    pkey, rkey = jax.random.split(key)
    params = init_params(pkey)
    weights = prepare_weights(params)

    # reference style vector (stands in for voice_embed[max_token_len])
    ref_s = jax.random.normal(rkey, (1, 2 * STYLE_DIM), dtype=jnp.float32)

    # two small phoneme-token sequences (ids < VOCAB)
    tokens_list = [[5, 12, 7, 33, 21, 9], [14, 3, 8, 40]]

    decoded = kokoro_forward(weights, tokens_list, ref_s, speed=1.0)
    for audio in decoded:
        jax.block_until_ready(audio)
        assert audio.ndim == 2 and audio.shape[0] == 1 and audio.shape[1] > 0
        assert bool(jnp.all(jnp.isfinite(audio)))
    print("KERNEL_OK")
</pallas_src>

<mosaic_0001>
module attributes {stable_mosaic.version = 11 : i64} {
  func.func @_encode_kernel(%arg0: i32, %arg1: memref<16x32xbf16, #tpu.memory_space<vmem>>, %arg2: memref<16x16xf32, #tpu.memory_space<vmem>>, %arg3: memref<32x32xbf16, #tpu.memory_space<vmem>>, %arg4: memref<1x32xf32, #tpu.memory_space<vmem>>, %arg5: memref<32x16xbf16, #tpu.memory_space<vmem>>, %arg6: memref<1x16xf32, #tpu.memory_space<vmem>>, %arg7: memref<32x32xbf16, #tpu.memory_space<vmem>>, %arg8: memref<1x32xf32, #tpu.memory_space<vmem>>, %arg9: memref<16x16xbf16, #tpu.memory_space<vmem>>, %arg10: memref<1x16xf32, #tpu.memory_space<vmem>>, %arg11: memref<16x8xbf16, #tpu.memory_space<vmem>>, %arg12: memref<1x8xf32, #tpu.memory_space<vmem>>, %arg13: memref<16x128xf32, #tpu.memory_space<vmem>>) attributes {dimension_semantics = [#tpu.dimension_semantics<parallel>], iteration_bounds = array<i64: 1>, scalar_prefetch = 0 : i64, scratch_operands = 0 : i64, tpu.core_type = #tpu.core_type<tc>, window_params = [{transform_indices = @transform_0, window_bounds = array<i64: 16, 32>}, {transform_indices = @transform_1, window_bounds = array<i64: 16, 16>}, {pipeline_mode = #tpu.pipeline_mode<synchronous>, transform_indices = @transform_2, window_bounds = array<i64: 32, 32>}, {pipeline_mode = #tpu.pipeline_mode<synchronous>, transform_indices = @transform_3, window_bounds = array<i64: 1, 32>}, {pipeline_mode = #tpu.pipeline_mode<synchronous>, transform_indices = @transform_4, window_bounds = array<i64: 32, 16>}, {pipeline_mode = #tpu.pipeline_mode<synchronous>, transform_indices = @transform_5, window_bounds = array<i64: 1, 16>}, {pipeline_mode = #tpu.pipeline_mode<synchronous>, transform_indices = @transform_6, window_bounds = array<i64: 32, 32>}, {pipeline_mode = #tpu.pipeline_mode<synchronous>, transform_indices = @transform_7, window_bounds = array<i64: 1, 32>}, {pipeline_mode = #tpu.pipeline_mode<synchronous>, transform_indices = @transform_8, window_bounds = array<i64: 16, 16>}, {pipeline_mode = #tpu.pipeline_mode<synchronous>, transform_indices = @transform_9, window_bounds = array<i64: 1, 16>}, {pipeline_mode = #tpu.pipeline_mode<synchronous>, transform_indices = @transform_10, window_bounds = array<i64: 16, 8>}, {pipeline_mode = #tpu.pipeline_mode<synchronous>, transform_indices = @transform_11, window_bounds = array<i64: 1, 8>}, {transform_indices = @transform_12, window_bounds = array<i64: 16, 128>}]} {
    %c0 = arith.constant 0 : index
    %c0_0 = arith.constant 0 : index
    %0 = vector.load %arg1[%c0, %c0_0] : memref<16x32xbf16, #tpu.memory_space<vmem>>, vector<16x32xbf16>
    %c0_1 = arith.constant 0 : index
    %c0_2 = arith.constant 0 : index
    %1 = vector.load %arg3[%c0_1, %c0_2] : memref<32x32xbf16, #tpu.memory_space<vmem>>, vector<32x32xbf16>
    %cst = arith.constant dense<0.000000e+00> : vector<16x32xf32>
    %2 = tpu.matmul %0, %1, %cst {dimension_numbers = #tpu.dot_dimension_numbers<[1], [0], [0], [1], [0, 0, 1, 1], [], []>} : vector<16x32xbf16>, vector<32x32xbf16>, vector<16x32xf32> -> vector<16x32xf32>
    %c0_3 = arith.constant 0 : index
    %c0_4 = arith.constant 0 : index
    %3 = vector.load %arg4[%c0_3, %c0_4] : memref<1x32xf32, #tpu.memory_space<vmem>>, vector<1x32xf32>
    %4 = vector.broadcast %3 : vector<1x32xf32> to vector<16x32xf32>
    %5 = arith.addf %2, %4 : vector<16x32xf32>
    %6 = arith.mulf %5, %5 : vector<16x32xf32>
    %7 = arith.mulf %5, %6 : vector<16x32xf32>
    %cst_5 = arith.constant 4.471500e-02 : f32
    %8 = vector.broadcast %cst_5 : f32 to vector<16x32xf32>
    %9 = arith.mulf %8, %7 : vector<16x32xf32>
    %10 = arith.addf %5, %9 : vector<16x32xf32>
    %cst_6 = arith.constant 0.797884583 : f32
    %11 = vector.broadcast %cst_6 : f32 to vector<16x32xf32>
    %12 = arith.mulf %11, %10 : vector<16x32xf32>
    %13 = math.tanh %12 : vector<16x32xf32>
    %cst_7 = arith.constant 1.000000e+00 : f32
    %14 = vector.broadcast %cst_7 : f32 to vector<16x32xf32>
    %15 = arith.addf %14, %13 : vector<16x32xf32>
    %cst_8 = arith.constant 5.000000e-01 : f32
    %16 = vector.broadcast %cst_8 : f32 to vector<16x32xf32>
    %17 = arith.mulf %16, %15 : vector<16x32xf32>
    %18 = arith.mulf %5, %17 : vector<16x32xf32>
    %19 = arith.truncf %18 : vector<16x32xf32> to vector<16x32xbf16>
    %c0_9 = arith.constant 0 : index
    %c0_10 = arith.constant 0 : index
    %20 = vector.load %arg5[%c0_9, %c0_10] : memref<32x16xbf16, #tpu.memory_space<vmem>>, vector<32x16xbf16>
    %cst_11 = arith.constant dense<0.000000e+00> : vector<16x16xf32>
    %21 = tpu.matmul %19, %20, %cst_11 {dimension_numbers = #tpu.dot_dimension_numbers<[1], [0], [0], [1], [0, 0, 1, 1], [], []>} : vector<16x32xbf16>, vector<32x16xbf16>, vector<16x16xf32> -> vector<16x16xf32>
    %c0_12 = arith.constant 0 : index
    %c0_13 = arith.constant 0 : index
    %22 = vector.load %arg6[%c0_12, %c0_13] : memref<1x16xf32, #tpu.memory_space<vmem>>, vector<1x16xf32>
    %23 = vector.broadcast %22 : vector<1x16xf32> to vector<16x16xf32>
    %24 = arith.addf %21, %23 : vector<16x16xf32>
    %c0_14 = arith.constant 0 : index
    %c0_15 = arith.constant 0 : index
    %25 = vector.load %arg2[%c0_14, %c0_15] : memref<16x16xf32, #tpu.memory_space<vmem>>, vector<16x16xf32>
    %26 = tpu.concatenate %24, %25 in 1 : vector<16x16xf32>, vector<16x16xf32> -> vector<16x32xf32>
    %27 = arith.truncf %26 : vector<16x32xf32> to vector<16x32xbf16>
    %c0_16 = arith.constant 0 : index
    %c0_17 = arith.constant 0 : index
    %28 = vector.load %arg7[%c0_16, %c0_17] : memref<32x32xbf16, #tpu.memory_space<vmem>>, vector<32x32xbf16>
    %cst_18 = arith.constant dense<0.000000e+00> : vector<16x32xf32>
    %29 = tpu.matmul %27, %28, %cst_18 {dimension_numbers = #tpu.dot_dimension_numbers<[1], [0], [0], [1], [0, 0, 1, 1], [], []>} : vector<16x32xbf16>, vector<32x32xbf16>, vector<16x32xf32> -> vector<16x32xf32>
    %c0_19 = arith.constant 0 : index
    %c0_20 = arith.constant 0 : index
    %30 = vector.load %arg8[%c0_19, %c0_20] : memref<1x32xf32, #tpu.memory_space<vmem>>, vector<1x32xf32>
    %31 = vector.broadcast %30 : vector<1x32xf32> to vector<16x32xf32>
    %32 = arith.addf %29, %31 : vector<16x32xf32>
    %33 = math.tanh %32 : vector<16x32xf32>
    %34 = vector.extract_strided_slice %33 {offsets = [0, 0], sizes = [16, 16], strides = [1, 1]} : vector<16x32xf32> to vector<16x16xf32>
    %35 = arith.truncf %34 : vector<16x16xf32> to vector<16x16xbf16>
    %c0_21 = arith.constant 0 : index
    %c0_22 = arith.constant 0 : index
    %36 = vector.load %arg9[%c0_21, %c0_22] : memref<16x16xbf16, #tpu.memory_space<vmem>>, vector<16x16xbf16>
    %cst_23 = arith.constant dense<0.000000e+00> : vector<16x16xf32>
    %37 = tpu.matmul %35, %36, %cst_23 {dimension_numbers = #tpu.dot_dimension_numbers<[1], [0], [0], [1], [0, 0, 1, 1], [], []>} : vector<16x16xbf16>, vector<16x16xbf16>, vector<16x16xf32> -> vector<16x16xf32>
    %c0_24 = arith.constant 0 : index
    %c0_25 = arith.constant 0 : index
    %38 = vector.load %arg10[%c0_24, %c0_25] : memref<1x16xf32, #tpu.memory_space<vmem>>, vector<1x16xf32>
    %39 = vector.broadcast %38 : vector<1x16xf32> to vector<16x16xf32>
    %40 = arith.addf %37, %39 : vector<16x16xf32>
    %41 = math.tanh %40 : vector<16x16xf32>
    %42 = arith.truncf %41 : vector<16x16xf32> to vector<16x16xbf16>
    %c0_26 = arith.constant 0 : index
    %c0_27 = arith.constant 0 : index
    %43 = vector.load %arg11[%c0_26, %c0_27] : memref<16x8xbf16, #tpu.memory_space<vmem>>, vector<16x8xbf16>
    %cst_28 = arith.constant dense<0.000000e+00> : vector<16x8xf32>
    %44 = tpu.matmul %42, %43, %cst_28 {dimension_numbers = #tpu.dot_dimension_numbers<[1], [0], [0], [1], [0, 0, 1, 1], [], []>} : vector<16x16xbf16>, vector<16x8xbf16>, vector<16x8xf32> -> vector<16x8xf32>
    %c0_29 = arith.constant 0 : index
    %c0_30 = arith.constant 0 : index
    %45 = vector.load %arg12[%c0_29, %c0_30] : memref<1x8xf32, #tpu.memory_space<vmem>>, vector<1x8xf32>
    %46 = vector.broadcast %45 : vector<1x8xf32> to vector<16x8xf32>
    %47 = arith.addf %44, %46 : vector<16x8xf32>
    %48 = arith.negf %47 : vector<16x8xf32>
    %49 = math.exp %48 : vector<16x8xf32>
    %cst_31 = arith.constant 1.000000e+00 : f32
    %50 = vector.broadcast %cst_31 : f32 to vector<16x8xf32>
    %51 = arith.addf %50, %49 : vector<16x8xf32>
    %52 = arith.divf %50, %51 : vector<16x8xf32>
    %cst_32 = arith.constant dense<0.000000e+00> : vector<16xf32>
    %53 = vector.multi_reduction <add>, %52, %cst_32 [1] : vector<16x8xf32> to vector<16xf32>
    %54 = vector.shape_cast %53 : vector<16xf32> to vector<16x1xf32>
    %cst_33 = arith.constant 1.000000e+00 : f32
    %55 = vector.broadcast %cst_33 : f32 to vector<16x1xf32>
    %56 = arith.mulf %54, %55 : vector<16x1xf32>
    %57 = vector.shape_cast %56 : vector<16x1xf32> to vector<16x1xf32>
    %58 = vector.broadcast %57 : vector<16x1xf32> to vector<16x96xf32>
    %59 = tpu.concatenate %33, %58 in 1 : vector<16x32xf32>, vector<16x96xf32> -> vector<16x128xf32>
    %c0_34 = arith.constant 0 : index
    %c0_35 = arith.constant 0 : index
    %60 = vector.load %arg13[%c0_34, %c0_35] : memref<16x128xf32, #tpu.memory_space<vmem>>, vector<16x128xf32>
    tpu.vector_store %arg13[%c0_34, %c0_35], %59 {strides = array<i32>} : memref<16x128xf32, #tpu.memory_space<vmem>>, vector<16x128xf32>,
    return
  }
  func.func @transform_0(%arg0: i32) -> (i32, i32) {
    %c0_i32 = arith.constant 0 : i32
    %c0_i32_0 = arith.constant 0 : i32
    return %arg0, %c0_i32 : i32, i32
  }
  func.func @transform_1(%arg0: i32) -> (i32, i32) {
    %c0_i32 = arith.constant 0 : i32
    %c0_i32_0 = arith.constant 0 : i32
    return %arg0, %c0_i32 : i32, i32
  }
  func.func @transform_2(%arg0: i32) -> (i32, i32) {
    %c0_i32 = arith.constant 0 : i32
    %c0_i32_0 = arith.constant 0 : i32
    %c0_i32_1 = arith.constant 0 : i32
    return %c0_i32, %c0_i32_0 : i32, i32
  }
  func.func @transform_3(%arg0: i32) -> (i32, i32) {
    %c0_i32 = arith.constant 0 : i32
    %c0_i32_0 = arith.constant 0 : i32
    %c0_i32_1 = arith.constant 0 : i32
    return %c0_i32, %c0_i32_0 : i32, i32
  }
  func.func @transform_4(%arg0: i32) -> (i32, i32) {
    %c0_i32 = arith.constant 0 : i32
    %c0_i32_0 = arith.constant 0 : i32
    %c0_i32_1 = arith.constant 0 : i32
    return %c0_i32, %c0_i32_0 : i32, i32
  }
  func.func @transform_5(%arg0: i32) -> (i32, i32) {
    %c0_i32 = arith.constant 0 : i32
    %c0_i32_0 = arith.constant 0 : i32
    %c0_i32_1 = arith.constant 0 : i32
    return %c0_i32, %c0_i32_0 : i32, i32
  }
  func.func @transform_6(%arg0: i32) -> (i32, i32) {
    %c0_i32 = arith.constant 0 : i32
    %c0_i32_0 = arith.constant 0 : i32
    %c0_i32_1 = arith.constant 0 : i32
    return %c0_i32, %c0_i32_0 : i32, i32
  }
  func.func @transform_7(%arg0: i32) -> (i32, i32) {
    %c0_i32 = arith.constant 0 : i32
    %c0_i32_0 = arith.constant 0 : i32
    %c0_i32_1 = arith.constant 0 : i32
    return %c0_i32, %c0_i32_0 : i32, i32
  }
  func.func @transform_8(%arg0: i32) -> (i32, i32) {
    %c0_i32 = arith.constant 0 : i32
    %c0_i32_0 = arith.constant 0 : i32
    %c0_i32_1 = arith.constant 0 : i32
    return %c0_i32, %c0_i32_0 : i32, i32
  }
  func.func @transform_9(%arg0: i32) -> (i32, i32) {
    %c0_i32 = arith.constant 0 : i32
    %c0_i32_0 = arith.constant 0 : i32
    %c0_i32_1 = arith.constant 0 : i32
    return %c0_i32, %c0_i32_0 : i32, i32
  }
  func.func @transform_10(%arg0: i32) -> (i32, i32) {
    %c0_i32 = arith.constant 0 : i32
    %c0_i32_0 = arith.constant 0 : i32
    %c0_i32_1 = arith.constant 0 : i32
    return %c0_i32, %c0_i32_0 : i32, i32
  }
  func.func @transform_11(%arg0: i32) -> (i32, i32) {
    %c0_i32 = arith.constant 0 : i32
    %c0_i32_0 = arith.constant 0 : i32
    %c0_i32_1 = arith.constant 0 : i32
    return %c0_i32, %c0_i32_0 : i32, i32
  }
  func.func @transform_12(%arg0: i32) -> (i32, i32) {
    %c0_i32 = arith.constant 0 : i32
    %c0_i32_0 = arith.constant 0 : i32
    return %arg0, %c0_i32 : i32, i32
  }
}

module attributes {stable_mosaic.version = 11 : i64} {
  func.func @_decode_kernel(%arg0: i32, %arg1: memref<8x512xbf16, #tpu.memory_space<vmem>>, %arg2: memref<8x512xbf16, #tpu.memory_space<vmem>>, %arg3: memref<512x64xbf16, #tpu.memory_space<vmem>>, %arg4: memref<1x64xf32, #tpu.memory_space<vmem>>, %arg5: memref<512x128xbf16, #tpu.memory_space<vmem>>, %arg6: memref<64x128xbf16, #tpu.memory_space<vmem>>, %arg7: memref<1x128xf32, #tpu.memory_space<vmem>>, %arg8: memref<8x128xf32, #tpu.memory_space<vmem>>) attributes {dimension_semantics = [#tpu.dimension_semantics<parallel>], iteration_bounds = array<i64: 1>, scalar_prefetch = 0 : i64, scratch_operands = 0 : i64, tpu.core_type = #tpu.core_type<tc>, window_params = [{transform_indices = @transform_0, window_bounds = array<i64: 8, 512>}, {transform_indices = @transform_1, window_bounds = array<i64: 8, 512>}, {pipeline_mode = #tpu.pipeline_mode<synchronous>, transform_indices = @transform_2, window_bounds = array<i64: 512, 64>}, {pipeline_mode = #tpu.pipeline_mode<synchronous>, transform_indices = @transform_3, window_bounds = array<i64: 1, 64>}, {pipeline_mode = #tpu.pipeline_mode<synchronous>, transform_indices = @transform_4, window_bounds = array<i64: 512, 128>}, {pipeline_mode = #tpu.pipeline_mode<synchronous>, transform_indices = @transform_5, window_bounds = array<i64: 64, 128>}, {pipeline_mode = #tpu.pipeline_mode<synchronous>, transform_indices = @transform_6, window_bounds = array<i64: 1, 128>}, {transform_indices = @transform_7, window_bounds = array<i64: 8, 128>}]} {
    %c0 = arith.constant 0 : index
    %c0_0 = arith.constant 0 : index
    %0 = vector.load %arg1[%c0, %c0_0] : memref<8x512xbf16, #tpu.memory_space<vmem>>, vector<8x512xbf16>
    %c0_1 = arith.constant 0 : index
    %c0_2 = arith.constant 0 : index
    %1 = vector.load %arg3[%c0_1, %c0_2] : memref<512x64xbf16, #tpu.memory_space<vmem>>, vector<512x64xbf16>
    %cst = arith.constant dense<0.000000e+00> : vector<8x64xf32>
    %2 = tpu.matmul %0, %1, %cst {dimension_numbers = #tpu.dot_dimension_numbers<[1], [0], [0], [1], [0, 0, 1, 1], [], []>} : vector<8x512xbf16>, vector<512x64xbf16>, vector<8x64xf32> -> vector<8x64xf32>
    %c0_3 = arith.constant 0 : index
    %c0_4 = arith.constant 0 : index
    %3 = vector.load %arg4[%c0_3, %c0_4] : memref<1x64xf32, #tpu.memory_space<vmem>>, vector<1x64xf32>
    %4 = vector.broadcast %3 : vector<1x64xf32> to vector<8x64xf32>
    %5 = arith.addf %2, %4 : vector<8x64xf32>
    %c0_5 = arith.constant 0 : index
    %c0_6 = arith.constant 0 : index
    %6 = vector.load %arg2[%c0_5, %c0_6] : memref<8x512xbf16, #tpu.memory_space<vmem>>, vector<8x512xbf16>
    %c0_7 = arith.constant 0 : index
    %c0_8 = arith.constant 0 : index
    %7 = vector.load %arg5[%c0_7, %c0_8] : memref<512x128xbf16, #tpu.memory_space<vmem>>, vector<512x128xbf16>
    %cst_9 = arith.constant dense<0.000000e+00> : vector<8x128xf32>
    %8 = tpu.matmul %6, %7, %cst_9 {dimension_numbers = #tpu.dot_dimension_numbers<[1], [0], [0], [1], [0, 0, 1, 1], [], []>} : vector<8x512xbf16>, vector<512x128xbf16>, vector<8x128xf32> -> vector<8x128xf32>
    %9 = arith.truncf %5 : vector<8x64xf32> to vector<8x64xbf16>
    %c0_10 = arith.constant 0 : index
    %c0_11 = arith.constant 0 : index
    %10 = vector.load %arg6[%c0_10, %c0_11] : memref<64x128xbf16, #tpu.memory_space<vmem>>, vector<64x128xbf16>
    %cst_12 = arith.constant dense<0.000000e+00> : vector<8x128xf32>
    %11 = tpu.matmul %9, %10, %cst_12 {dimension_numbers = #tpu.dot_dimension_numbers<[1], [0], [0], [1], [0, 0, 1, 1], [], []>} : vector<8x64xbf16>, vector<64x128xbf16>, vector<8x128xf32> -> vector<8x128xf32>
    %12 = arith.addf %8, %11 : vector<8x128xf32>
    %c0_13 = arith.constant 0 : index
    %c0_14 = arith.constant 0 : index
    %13 = vector.load %arg7[%c0_13, %c0_14] : memref<1x128xf32, #tpu.memory_space<vmem>>, vector<1x128xf32>
    %14 = vector.broadcast %13 : vector<1x128xf32> to vector<8x128xf32>
    %15 = arith.addf %12, %14 : vector<8x128xf32>
    %16 = math.tanh %15 : vector<8x128xf32>
    %c0_15 = arith.constant 0 : index
    %c0_16 = arith.constant 0 : index
    %17 = vector.load %arg8[%c0_15, %c0_16] : memref<8x128xf32, #tpu.memory_space<vmem>>, vector<8x128xf32>
    tpu.vector_store %arg8[%c0_15, %c0_16], %16 {strides = array<i32>} : memref<8x128xf32, #tpu.memory_space<vmem>>, vector<8x128xf32>,
    return
  }
  func.func @transform_0(%arg0: i32) -> (i32, i32) {
    %c0_i32 = arith.constant 0 : i32
    %c0_i32_0 = arith.constant 0 : i32
    return %arg0, %c0_i32 : i32, i32
  }
  func.func @transform_1(%arg0: i32) -> (i32, i32) {
    %c0_i32 = arith.constant 0 : i32
    %c0_i32_0 = arith.constant 0 : i32
    return %arg0, %c0_i32 : i32, i32
  }
  func.func @transform_2(%arg0: i32) -> (i32, i32) {
    %c0_i32 = arith.constant 0 : i32
    %c0_i32_0 = arith.constant 0 : i32
    %c0_i32_1 = arith.constant 0 : i32
    return %c0_i32, %c0_i32_0 : i32, i32
  }
  func.func @transform_3(%arg0: i32) -> (i32, i32) {
    %c0_i32 = arith.constant 0 : i32
    %c0_i32_0 = arith.constant 0 : i32
    %c0_i32_1 = arith.constant 0 : i32
    return %c0_i32, %c0_i32_0 : i32, i32
  }
  func.func @transform_4(%arg0: i32) -> (i32, i32) {
    %c0_i32 = arith.constant 0 : i32
    %c0_i32_0 = arith.constant 0 : i32
    %c0_i32_1 = arith.constant 0 : i32
    return %c0_i32, %c0_i32_0 : i32, i32
  }
  func.func @transform_5(%arg0: i32) -> (i32, i32) {
    %c0_i32 = arith.constant 0 : i32
    %c0_i32_0 = arith.constant 0 : i32
    %c0_i32_1 = arith.constant 0 : i32
    return %c0_i32, %c0_i32_0 : i32, i32
  }
  func.func @transform_6(%arg0: i32) -> (i32, i32) {
    %c0_i32 = arith.constant 0 : i32
    %c0_i32_0 = arith.constant 0 : i32
    %c0_i32_1 = arith.constant 0 : i32
    return %c0_i32, %c0_i32_0 : i32, i32
  }
  func.func @transform_7(%arg0: i32) -> (i32, i32) {
    %c0_i32 = arith.constant 0 : i32
    %c0_i32_0 = arith.constant 0 : i32
    return %arg0, %c0_i32 : i32, i32
  }
}

</mosaic_0001>

<bundles_post_ra>
// kernel: _kokoro_device.2
= control target key start
LH: loop header
LB: loop body
LE: loop exit
PB: predicated region body
PF: predicated region fallthrough
CT: control target
= control target key end

     0   :  { %v542_v0 = vmov 0.0   ;;  %vm543_vm0 = vmmov 0   ;;  %vm72_vm1 = vcmask 261120   ;;  %s544_s15 = smov 16   ;;  %vm213_vm2 = vcmask 130048   ;;  %s691_s2 = inlined_call_operand.vmem [shape: bf16[32,32], index: 2, kind: input, shape index: {}]   ;;  %s692_s0 = inlined_call_operand.vmem [shape: bf16[16,32], index: 0, kind: input, shape index: {}]   ;;  %s693_s4 = inlined_call_operand.vmem [shape: bf16[32,16], index: 4, kind: input, shape index: {}]   ;;  %s694_s1 = inlined_call_operand.vmem [shape: f32[16,16], index: 1, kind: input, shape index: {}]   ;;  %s695_s3 = inlined_call_operand.vmem [shape: f32[1,32], index: 3, kind: input, shape index: {}]   ;;  %s696_s6 = inlined_call_operand.vmem [shape: bf16[32,32], index: 6, kind: input, shape index: {}]   ;;  %s697_s5 = inlined_call_operand.vmem [shape: f32[1,16], index: 5, kind: input, shape index: {}]   ;;  %s698_s8 = inlined_call_operand.vmem [shape: bf16[16,16], index: 8, kind: input, shape index: {}]   ;;  %s699_s7 = inlined_call_operand.vmem [shape: f32[1,32], index: 7, kind: input, shape index: {}]   ;;  %s700_s10 = inlined_call_operand.vmem [shape: bf16[16,8], index: 10, kind: input, shape index: {}]   ;;  %s701_s9 = inlined_call_operand.vmem [shape: f32[1,16], index: 9, kind: input, shape index: {}]   ;;  %s702_s11 = inlined_call_operand.vmem [shape: f32[1,8], index: 11, kind: input, shape index: {}]   ;;  %s703_s12 = inlined_call_operand.vmem [shape: f32[16,128], index: 12, kind: output, shape index: {}]  }
   0x1   :  { %469 = vmatprep.subr.bf16.mxu0 %v542_v0  ;;  %v513_v1 = vld [vmem:[%s691_s2 + $0x8] sm:$0xff]   ;;  %473 = vmatprep.mubr.msk.bf16.mxu0 %vm543_vm0, %v542_v0  ;;  %v514_v2 = vld [vmem:[%s691_s2] sm:$0xff]   ;;  %vm420_vm3 = vcmask 64512  }
   0x2   :  { %477 = vmatprep.subr.bf16.mxu1 %v542_v0  ;;  %481 = vmatprep.mubr.msk.bf16.mxu1 %vm543_vm0, %v542_v0  ;;  %v515_v3 = vld [vmem:[%s692_s0] sm:$0xff]   ;;  %v516_v4 = vld [vmem:[%s693_s4 + $0x8] sm:$0xff]  }
   0x3   :  { %470 = vmatpush3.bf16.msra.mxu0 %v513_v1  ;;  %478 = vmatpush3.bf16.msra.mxu1 %v516_v4  ;;  %v517_v5 = vld [vmem:[%s693_s4] sm:$0xff]   ;;  %v204_v7 = vld [vmem:[%s694_s1 + $0x8] sm:$0xff] }
   0x4   :  { %471 = vmatprep.subr.bf16.mxu0 %v542_v0  ;;  %479 = vmatprep.subr.bf16.mxu1 %v542_v0  ;;  %v203_v6 = vld [vmem:[%s694_s1] sm:$0xff]  ;;  %v518_v35 = vld [vmem:[%s696_s6 + $0x8] sm:$0xff]  }
   0x5   :  { %v508_v8 = vpack.i.bf16 %v204_v7, %v203_v6  ;;  %v435_v9 = vld [vmem:[%s695_s3] ss:$0 sm:$0xff] }
   0x6   :  { %v519_v36 = vld [vmem:[%s696_s6] sm:$0xff]  }
   0x7   :  { %472 = vmatpush3.bf16.msra.mxu0 %v514_v2  ;;  %480 = vmatpush3.bf16.msra.mxu1 %v517_v5  ;;  %v440_v38 = vld [vmem:[%s697_s5] ss:$0 sm:$0xff] }
   0x8   :  { %485 = vmatprep.subr.bf16.mxu0 %v542_v0  ;;  %493 = vmatprep.subr.bf16.mxu1 %v542_v0  ;;  %v520_v50 = vld [vmem:[%s698_s8] sm:$0xff]  }
   0x9   :  { %509 = vrot.lane.b32.xlu0 %v508_v8, %s544_s15  ;;  %v444_v51 = vld [vmem:[%s699_s7] ss:$0 sm:$0xff] }
   0xa   :  { %474 = vmatmul.mubr.msk.bf16.vlgmr.msra.gmra.mxu0 %vm72_vm1, %v515_v3  ;;  %v521_v61 = vld [vmem:[%s700_s10] sm:$0xff]  }
   0xb   :  { %489 = vmatprep.mubr.msk.bf16.mxu0 %vm543_vm0, %v542_v0  ;;  %486 = vmatpush3.bf16.msra.mxu0 %v518_v35  ;;  %v448_v62 = vld [vmem:[%s701_s9] ss:$0 sm:$0xff] }
   0xc   :  { %487 = vmatprep.subr.bf16.mxu0 %v542_v0  ;;  %v451_v8 = vld [vmem:[%s702_s11] ss:$0 sm:$0xff] }
   0xf   :  { %488 = vmatpush3.bf16.msra.mxu0 %v519_v36 }
  0x10   :  { %499 = vmatprep.subr.bf16.mxu0 %v542_v0 }
  0x7b   :  { %v510_v37 = vpop.permute.xlu0 %509 }
  0x7c   :  { %v512_v41 = vunpack.i.h.bf16 %v510_v37  ;;  %v511_v42 = vunpack.i.l.bf16 %v510_v37 }
  0xca   :  { %v110_v10 = vpop.f32.mrf.mxu0 }
  0xcb   :  { %v111_v11 = vadd.f32 %v435_v9, %v110_v10 }
  0xcc   :  { %v475_v12 = vpop.f32.mrf.mxu0 }
  0xcd   :  { %v117_v13 = vmul.f32 %v111_v11, %v111_v11 }
  0xce   :  { %v113_v14 = vpop.f32.mrf.mxu0 }
  0xcf   :  { %v119_v15 = vmul.f32 %v117_v13, %v111_v11  ;;  %v114_v16 = vadd.f32 %v435_v9, %v113_v14 }
  0xd0   :  { %v476_v17 = vpop.f32.mrf.mxu0 }
  0xd1   :  { %v121_v18 = vmul.f32 0.044715, %v119_v15  ;;  %v118_v19 = vmul.f32 %v114_v16, %v114_v16 }
  0xd3   :  { %v123_v20 = vadd.f32 %v121_v18, %v111_v11  ;;  %v120_v21 = vmul.f32 %v118_v19, %v114_v16 }
  0xd5   :  { %v125_v22 = vmul.f32 0.7978846, %v123_v20  ;;  %v122_v23 = vmul.f32 0.044715, %v120_v21 }
  0xd7   :  { %522 = vtanh.f32 %v125_v22  ;;  %v124_v24 = vadd.f32 %v122_v23, %v114_v16 }
  0xd9   :  { %v126_v25 = vmul.f32 0.7978846, %v124_v24 }
  0xdb   :  { %524 = vtanh.f32 %v126_v25 }
  0xe4   :  { %v523_v26 = vpop.eup %522 }
  0xe5   :  { %v129_v27 = vadd.f32 1.0, %v523_v26 }
  0xe7   :  { %v131_v29 = vmul.f32 0.5, %v129_v27 }
  0xe8   :  { %v525_v28 = vpop.eup %524 }
  0xe9   :  { %v130_v30 = vadd.f32 1.0, %v525_v28  ;;  %v133_v32 = vmul.f32 %v131_v29, %v111_v11 }
  0xeb   :  { %v132_v31 = vmul.f32 0.5, %v130_v30 }
  0xed   :  { %v134_v33 = vmul.f32 %v132_v31, %v114_v16 }
  0xef   :  { %v135_v34 = vpack.c.bf16 %v134_v33, %v133_v32 }
  0xf1   :  { %482 = vmatmul.mubr.msk.bf16.vlgmr.msra.gmra.mxu1 %vm72_vm1, %v135_v34 }
  0xf2   :  { %495 = vmatprep.mubr.msk.bf16.mxu1 %vm543_vm0, %v542_v0  ;;  %494 = vmatpush3.bf16.msra.mxu1 %v520_v50 }
 0x1b1   :  { %v196_v39 = vpop.f32.mrf.mxu1 }
 0x1b2   :  { %v197_v43 = vadd.f32 %v440_v38, %v196_v39 }
 0x1b3   :  { %v483_v40 = vpop.f32.mrf.mxu1 }
 0x1b4   :  { %v214_v47 = vsel %vm213_vm2, %v197_v43, %v511_v42 }
 0x1b5   :  { %v199_v44 = vpop.f32.mrf.mxu1 }
 0x1b6   :  { %v200_v45 = vadd.f32 %v440_v38, %v199_v44 }
 0x1b7   :  { %v484_v46 = vpop.f32.mrf.mxu1 }
 0x1b8   :  { %v215_v48 = vsel %vm213_vm2, %v200_v45, %v512_v41 }
 0x1b9   :  { %v216_v49 = vpack.c.bf16 %v215_v48, %v214_v47 }
 0x1bb   :  { %490 = vmatmul.mubr.msk.bf16.vlgmr.msra.gmra.mxu0 %vm72_vm1, %v216_v49 }
 0x1bc   :  { %501 = vmatprep.mubr.msk.bf16.mxu0 %vm543_vm0, %v542_v0  ;;  %500 = vmatpush3.bf16.msra.mxu0 %v521_v61 }
 0x27b   :  { %v277_v52 = vpop.f32.mrf.mxu0 }
 0x27c   :  { %v278_v53 = vadd.f32 %v444_v51, %v277_v52 }
 0x27d   :  { %v491_v54 = vpop.f32.mrf.mxu0 }
 0x27e   :  { %526 = vtanh.f32 %v278_v53 }
 0x27f   :  { %v280_v55 = vpop.f32.mrf.mxu0 }
 0x280   :  { %v281_v56 = vadd.f32 %v444_v51, %v280_v55 }
 0x281   :  { %v492_v57 = vpop.f32.mrf.mxu0 }
 0x282   :  { %528 = vtanh.f32 %v281_v56 }
 0x28b   :  { %v527_v58 = vpop.eup %526 }
 0x28f   :  { %v529_v59 = vpop.eup %528 }
 0x290   :  { %v286_v60 = vpack.c.bf16 %v529_v59, %v527_v58 }
 0x292   :  { %496 = vmatmul.mubr.msk.bf16.vlgmr.msra.gmra.mxu1 %vm213_vm2, %v286_v60 }
 0x352   :  { %v339_v63 = vpop.f32.mrf.mxu1 }
 0x353   :  { %v340_v0 = vadd.f32 %v448_v62, %v339_v63 }
 0x354   :  { %v497_v1 = vpop.f32.mrf.mxu1 }
 0x355   :  { %530 = vtanh.f32 %v340_v0 }
 0x356   :  { %v342_v2 = vpop.f32.mrf.mxu1 }
 0x357   :  { %v343_v3 = vadd.f32 %v448_v62, %v342_v2 }
 0x358   :  { %v498_v4 = vpop.f32.mrf.mxu1 }
 0x359   :  { %532 = vtanh.f32 %v343_v3 }
 0x362   :  { %v531_v5 = vpop.eup %530 }
 0x366   :  { %v533_v6 = vpop.eup %532 }
 0x367   :  { %v348_v7 = vpack.c.bf16 %v533_v6, %v531_v5 }
 0x369   :  { %502 = vmatmul.mubr.msk.bf16.vlgmr.msra.gmra.mxu0 %vm213_vm2, %v348_v7 }
 0x429   :  { %v401_v9 = vpop.f32.mrf.mxu0 }
 0x42a   :  { %v402_v10 = vadd.f32 %v451_v8, %v401_v9 }
 0x42b   :  { %v503_v11 = vpop.f32.mrf.mxu0 }
 0x42c   :  { %v454_v12 = vmul.f32 -1.442695, %v402_v10 }
 0x42d   :  { %v404_v13 = vpop.f32.mrf.mxu0 }
 0x42e   :  { %534 = vpow2.f32 %v454_v12  ;;  %v405_v14 = vadd.f32 %v451_v8, %v404_v13 }
 0x42f   :  { %v504_v15 = vpop.f32.mrf.mxu0 }
 0x430   :  { %v455_v16 = vmul.f32 -1.442695, %v405_v14 }
 0x432   :  { %536 = vpow2.f32 %v455_v16 }
 0x43b   :  { %v535_v17 = vpop.eup %534 }
 0x43c   :  { %v414_v18 = vadd.f32 1.0, %v535_v17 }
 0x43e   :  { %538 = vrcp.f32 %v414_v18 }
 0x43f   :  { %v537_v19 = vpop.eup %536 }
 0x440   :  { %v415_v20 = vadd.f32 1.0, %v537_v19 }
 0x442   :  { %540 = vrcp.f32 %v415_v20 }
 0x44b   :  { %v539_v21 = vpop.eup %538 }
 0x44c   :  { %v421_v22 = vsel %vm420_vm3, %v539_v21, 0.0 }
 0x44d   :  { %422 = vadd.xlane.f32.xlu0 %v421_v22 }
 0x44f   :  { %v541_v23 = vpop.eup %540 }
 0x450   :  { %v424_v24 = vsel %vm420_vm3, %v541_v23, 0.0 }
 0x451   :  { %425 = vadd.xlane.f32.xlu1 %v424_v24 }
 0x4d6   :  { %v423_v25 = vpop.xlane.xlu0 %422 }
 0x4d7   :  { %v427_v26 = vsel %vm72_vm1, %v527_v58, %v423_v25 }
 0x4d8   :  { %429 = vst [vmem:[%s703_s12] sm:$0xff] %v427_v26 }
 0x4da   :  { %v426_v27 = vpop.xlane.xlu1 %425 }
 0x4db   :  { %v428_v28 = vsel %vm72_vm1, %v529_v59, %v426_v27 }
 0x4dc   :  { %430 = vst [vmem:[%s703_s12 + $0x8] sm:$0xff] %v428_v28 }

// kernel: _kokoro_device.3
= control target key start
LH: loop header
LB: loop body
LE: loop exit
PB: predicated region body
PF: predicated region fallthrough
CT: control target
= control target key end

     0   :  { %v1093_v40 = vmov 0.0   ;;  %vm1094_vm0 = vmmov 0   ;;  %vm485_vm1 = vcmask 523264   ;;  %s1360_s2 = inlined_call_operand.vmem [shape: bf16[512,64], index: 2, kind: input, shape index: {}]   ;;  %s1361_s0 = inlined_call_operand.vmem [shape: bf16[8,512], index: 0, kind: input, shape index: {}]   ;;  %s1362_s4 = inlined_call_operand.vmem [shape: bf16[512,128], index: 4, kind: input, shape index: {}]   ;;  %s1363_s5 = inlined_call_operand.vmem [shape: bf16[64,128], index: 5, kind: input, shape index: {}]   ;;  %s1364_s1 = inlined_call_operand.vmem [shape: bf16[8,512], index: 1, kind: input, shape index: {}]   ;;  %s1365_s3 = inlined_call_operand.vmem [shape: f32[1,64], index: 3, kind: input, shape index: {}]   ;;  %s1366_s6 = inlined_call_operand.vmem [shape: f32[1,128], index: 6, kind: input, shape index: {}]   ;;  %s1367_s7 = inlined_call_operand.vmem [shape: f32[8,128], index: 7, kind: output, shape index: {}]  }
   0x1   :  { %v1015_v0 = vld [vmem:[%s1360_s2 + $0x78] sm:$0xff]   ;;  %v1019_v4 = vld [vmem:[%s1360_s2 + $0x70] sm:$0xff]   ;;  %v1023_v8 = vld [vmem:[%s1360_s2 + $0x68] sm:$0xff]  }
   0x2   :  { %v1016_v1 = vld [vmem:[%s1360_s2 + $0xf8] sm:$0xff]   ;;  %908 = vmatprep.subr.bf16.mxu0 %v1015_v0  ;;  %v1020_v5 = vld [vmem:[%s1360_s2 + $0xf0] sm:$0xff]   ;;  %v1024_v9 = vld [vmem:[%s1360_s2 + $0xe8] sm:$0xff]  }
   0x3   :  { %v1017_v2 = vld [vmem:[%s1360_s2 + $0x38] sm:$0xff]   ;;  %930 = vmatprep.subr.bf16.mxu1 %v1016_v1  ;;  %v1021_v6 = vld [vmem:[%s1360_s2 + $0x30] sm:$0xff]   ;;  %v1025_v10 = vld [vmem:[%s1360_s2 + $0x28] sm:$0xff]  }
   0x4   :  { %v1018_v3 = vld [vmem:[%s1360_s2 + $0xb8] sm:$0xff]   ;;  %909 = vmatpush3.bf16.msra.mxu0 %v1017_v2  ;;  %v1022_v7 = vld [vmem:[%s1360_s2 + $0xb0] sm:$0xff]   ;;  %v1026_v11 = vld [vmem:[%s1360_s2 + $0xa8] sm:$0xff]  }
   0x5   :  { %931 = vmatpush3.bf16.msra.mxu1 %v1018_v3  ;;  %910 = vmatprep.subr.bf16.mxu0 %v1019_v4  ;;  %v1027_v12 = vld [vmem:[%s1360_s2 + $0x60] sm:$0xff]   ;;  %v1031_v16 = vld [vmem:[%s1360_s2 + $0x58] sm:$0xff]   ;;  %v1035_v20 = vld [vmem:[%s1360_s2 + $0x50] sm:$0xff]  }
   0x6   :  { %932 = vmatprep.subr.bf16.mxu1 %v1020_v5  ;;  %v1028_v13 = vld [vmem:[%s1360_s2 + $0xe0] sm:$0xff]   ;;  %v1032_v17 = vld [vmem:[%s1360_s2 + $0xd8] sm:$0xff]   ;;  %v1036_v21 = vld [vmem:[%s1360_s2 + $0xd0] sm:$0xff]  }
   0x7   :  { %v1029_v14 = vld [vmem:[%s1360_s2 + $0x20] sm:$0xff]   ;;  %v1033_v18 = vld [vmem:[%s1360_s2 + $0x18] sm:$0xff]   ;;  %v1037_v22 = vld [vmem:[%s1360_s2 + $0x10] sm:$0xff]  }
   0x8   :  { %911 = vmatpush3.bf16.msra.mxu0 %v1021_v6  ;;  %v1030_v15 = vld [vmem:[%s1360_s2 + $0xa0] sm:$0xff]   ;;  %v1034_v19 = vld [vmem:[%s1360_s2 + $0x98] sm:$0xff]   ;;  %v1038_v23 = vld [vmem:[%s1360_s2 + $0x90] sm:$0xff]  }
   0x9   :  { %933 = vmatpush3.bf16.msra.mxu1 %v1022_v7  ;;  %912 = vmatprep.subr.bf16.mxu0 %v1023_v8  ;;  %v1039_v24 = vld [vmem:[%s1360_s2 + $0x48] sm:$0xff]   ;;  %v1043_v28 = vld [vmem:[%s1360_s2 + $0x40] sm:$0xff]   ;;  %v1051_v38 = vld [vmem:[%s1362_s4 + $0x78] sm:$0xff]  }
   0xa   :  { %934 = vmatprep.subr.bf16.mxu1 %v1024_v9  ;;  %v1040_v25 = vld [vmem:[%s1360_s2 + $0xc8] sm:$0xff]   ;;  %v1044_v29 = vld [vmem:[%s1360_s2 + $0xc0] sm:$0xff]   ;;  %v1052_v39 = vld [vmem:[%s1362_s4 + $0x38] sm:$0xff]  }
   0xb   :  { %v1041_v26 = vld [vmem:[%s1360_s2 + $0x8] sm:$0xff]   ;;  %v1045_v30 = vld [vmem:[%s1360_s2] sm:$0xff]   ;;  %v1053_v41 = vld [vmem:[%s1362_s4 + $0x70] sm:$0xff]  }
   0xc   :  { %913 = vmatpush3.bf16.msra.mxu0 %v1025_v10  ;;  %v1042_v27 = vld [vmem:[%s1360_s2 + $0x88] sm:$0xff]   ;;  %v1046_v31 = vld [vmem:[%s1360_s2 + $0x80] sm:$0xff]   ;;  %v1054_v42 = vld [vmem:[%s1362_s4 + $0x30] sm:$0xff]  }
   0xd   :  { %935 = vmatpush3.bf16.msra.mxu1 %v1026_v11  ;;  %914 = vmatprep.subr.bf16.mxu0 %v1027_v12  ;;  %v27_v32 = vld [vmem:[%s1361_s0] sm:$0xff]  ;;  %v28_v33 = vld [vmem:[%s1361_s0 + $0x8] sm:$0xff]  ;;  %v1061_v46 = vld [vmem:[%s1363_s5 + $0x18] sm:$0xff]  }
   0xe   :  { %936 = vmatprep.subr.bf16.mxu1 %v1028_v13  ;;  %v830_v34 = vcombine.low %v27_v32, %v27_v32  ;;  %v831_v35 = vcombine.high %v27_v32, %v27_v32  ;;  %v832_v36 = vcombine.low %v28_v33, %v28_v33  ;;  %v833_v37 = vcombine.high %v28_v33, %v28_v33  ;;  %v1055_v43 = vld [vmem:[%s1362_s4 + $0x68] sm:$0xff]   ;;  %v1057_v45 = vld [vmem:[%s1362_s4 + $0x60] sm:$0xff]   ;;  %v1064_v48 = vld [vmem:[%s1363_s5 + $0x10] sm:$0xff]  }
   0xf   :  { %v1056_v44 = vld [vmem:[%s1362_s4 + $0x28] sm:$0xff]   ;;  %v1058_v47 = vld [vmem:[%s1362_s4 + $0x20] sm:$0xff]   ;;  %v1059_v49 = vld [vmem:[%s1362_s4 + $0x58] sm:$0xff]  }
  0x10   :  { %915 = vmatpush3.bf16.msra.mxu0 %v1029_v14  ;;  %338 = vmatprep.mubr.bf16.mxu0 %v831_v35  ;;  %v1060_v50 = vld [vmem:[%s1362_s4 + $0x18] sm:$0xff]   ;;  %v1062_v51 = vld [vmem:[%s1362_s4 + $0x50] sm:$0xff]   ;;  %v1065_v53 = vld [vmem:[%s1362_s4 + $0x48] sm:$0xff]  }
  0x11   :  { %937 = vmatpush3.bf16.msra.mxu1 %v1030_v15  ;;  %916 = vmatprep.subr.bf16.mxu0 %v1031_v16  ;;  %v1063_v52 = vld [vmem:[%s1362_s4 + $0x10] sm:$0xff]   ;;  %v1066_v54 = vld [vmem:[%s1362_s4 + $0x8] sm:$0xff]   ;;  %v1068_v56 = vld [vmem:[%s1362_s4 + $0x40] sm:$0xff]  }
  0x12   :  { %938 = vmatprep.subr.bf16.mxu1 %v1032_v17  ;;  %378 = vmatprep.mubr.bf16.mxu1 %v833_v37  ;;  %v1067_v55 = vld [vmem:[%s1363_s5 + $0x8] sm:$0xff]   ;;  %v1069_v57 = vld [vmem:[%s1362_s4] sm:$0xff]   ;;  %v1073_v62 = vld [vmem:[%s1362_s4 + $0xf8] sm:$0xff]  }
  0x13   :  { %v386_v58 = vld [vmem:[%s1364_s1] sm:$0xff]  ;;  %v387_v9 = vld [vmem:[%s1364_s1 + $0x8] sm:$0xff]  ;;  %v1074_v13 = vld [vmem:[%s1362_s4 + $0xb8] sm:$0xff]  }
  0x14   :  { %917 = vmatpush3.bf16.msra.mxu0 %v1033_v18  ;;  %v872_v59 = vcombine.high %v386_v58, %v386_v58  ;;  %v871_v60 = vcombine.low %v386_v58, %v386_v58  ;;  %v1072_v61 = vld [vmem:[%s1363_s5] sm:$0xff]   ;;  %v874_v14 = vcombine.high %v387_v9, %v387_v9  ;;  %v1075_v16 = vld [vmem:[%s1362_s4 + $0xf0] sm:$0xff]   ;;  %v1077_v18 = vld [vmem:[%s1362_s4 + $0xe8] sm:$0xff]  }
  0x15   :  { %939 = vmatpush3.bf16.msra.mxu1 %v1034_v19  ;;  %918 = vmatprep.subr.bf16.mxu0 %v1035_v20  ;;  %v829_v1 = vld [vmem:[%s1365_s3] ss:$0 sm:$0xff]  ;;  %v1076_v17 = vld [vmem:[%s1362_s4 + $0xb0] sm:$0xff]   ;;  %v1078_v19 = vld [vmem:[%s1362_s4 + $0xa8] sm:$0xff]  }
  0x16   :  { %940 = vmatprep.subr.bf16.mxu1 %v1036_v21  ;;  %v1079_v20 = vld [vmem:[%s1362_s4 + $0xe0] sm:$0xff]  }
  0x17   :  { %v1080_v21 = vld [vmem:[%s1362_s4 + $0xa0] sm:$0xff]  }
  0x18   :  { %919 = vmatpush3.bf16.msra.mxu0 %v1037_v22  ;;  %v1081_v22 = vld [vmem:[%s1362_s4 + $0xd8] sm:$0xff]  }
  0x19   :  { %941 = vmatpush3.bf16.msra.mxu1 %v1038_v23  ;;  %920 = vmatprep.subr.bf16.mxu0 %v1039_v24  ;;  %v1082_v23 = vld [vmem:[%s1362_s4 + $0x98] sm:$0xff]   ;;  %v1083_v24 = vld [vmem:[%s1362_s4 + $0xd0] sm:$0xff]  }
  0x1a   :  { %942 = vmatprep.subr.bf16.mxu1 %v1040_v25  ;;  %v1084_v25 = vld [vmem:[%s1362_s4 + $0x90] sm:$0xff]  }
  0x1c   :  { %921 = vmatpush3.bf16.msra.mxu0 %v1041_v26  ;;  %v1085_v26 = vld [vmem:[%s1362_s4 + $0xc8] sm:$0xff]  }
  0x1d   :  { %943 = vmatpush3.bf16.msra.mxu1 %v1042_v27  ;;  %922 = vmatprep.subr.bf16.mxu0 %v1043_v28  ;;  %v1086_v27 = vld [vmem:[%s1362_s4 + $0x88] sm:$0xff]   ;;  %v1087_v28 = vld [vmem:[%s1362_s4 + $0xc0] sm:$0xff]  }
  0x1e   :  { %944 = vmatprep.subr.bf16.mxu1 %v1044_v29  ;;  %v1088_v29 = vld [vmem:[%s1362_s4 + $0x80] sm:$0xff]  }
  0x20   :  { %923 = vmatpush3.bf16.msra.mxu0 %v1045_v30  ;;  %v873_v30 = vcombine.low %v387_v9, %v387_v9 }
  0x21   :  { %945 = vmatpush3.bf16.msra.mxu1 %v1046_v31  ;;  %1001 = vmatprep.subr.bf16.mxu0 %v1093_v40 }
  0x22   :  { %957 = vmatprep.subr.bf16.mxu1 %v1051_v38 }
  0x23   :  { %339 = vmatmul.mubr.bf16.vlgmr.msra.gmra.mxu0 %v830_v34 }
  0x24   :  { %379 = vmatmul.mubr.bf16.vlgmr.msra.gmra.mxu1 %v832_v36  ;;  %1002 = vmatpush3.bf16.msra.mxu0 %v1061_v46 }
  0x25   :  { %958 = vmatpush3.bf16.msra.mxu1 %v1052_v39  ;;  %1003 = vmatprep.subr.bf16.mxu0 %v1093_v40 }
  0x26   :  { %959 = vmatprep.subr.bf16.mxu1 %v1053_v41  ;;  %767 = vmatprep.mubr.bf16.mxu1 %v872_v59 }
  0x27   :  { %1009 = vmatprep.mubr.msk.bf16.mxu0 %vm1094_vm0, %v1093_v40 }
  0x28   :  { %1004 = vmatpush3.bf16.msra.mxu0 %v1064_v48 }
  0x29   :  { %960 = vmatpush3.bf16.msra.mxu1 %v1054_v42  ;;  %1005 = vmatprep.subr.bf16.mxu0 %v1093_v40 }
  0x2a   :  { %961 = vmatprep.subr.bf16.mxu1 %v1055_v43 }
  0x2c   :  { %1006 = vmatpush3.bf16.msra.mxu0 %v1067_v55 }
  0x2d   :  { %962 = vmatpush3.bf16.msra.mxu1 %v1056_v44  ;;  %1007 = vmatprep.subr.bf16.mxu0 %v1093_v40  ;;  %v907_v44 = vld [vmem:[%s1366_s6] ss:$0 sm:$0xff] }
  0x2e   :  { %963 = vmatprep.subr.bf16.mxu1 %v1057_v45 }
  0x30   :  { %1008 = vmatpush3.bf16.msra.mxu0 %v1072_v61 }
  0x31   :  { %964 = vmatpush3.bf16.msra.mxu1 %v1058_v47  ;;  %979 = vmatprep.subr.bf16.mxu0 %v1073_v62 }
  0x32   :  { %965 = vmatprep.subr.bf16.mxu1 %v1059_v49 }
  0x35   :  { %966 = vmatpush3.bf16.msra.mxu1 %v1060_v50 }
  0x36   :  { %967 = vmatprep.subr.bf16.mxu1 %v1062_v51 }
  0x39   :  { %968 = vmatpush3.bf16.msra.mxu1 %v1063_v52 }
  0x3a   :  { %969 = vmatprep.subr.bf16.mxu1 %v1065_v53 }
  0x3d   :  { %970 = vmatpush3.bf16.msra.mxu1 %v1066_v54 }
  0x3e   :  { %971 = vmatprep.subr.bf16.mxu1 %v1068_v56 }
  0x41   :  { %972 = vmatpush3.bf16.msra.mxu1 %v1069_v57 }
  0x44   :  { %768 = vmatmul.mubr.bf16.vlgmr.msra.gmra.mxu1 %v871_v60 }
  0xe3   :  { %v924_v63 = vpop.f32.mrf.mxu0 }
  0xe4   :  { %v946_v0 = vpop.f32.mrf.mxu1 }
  0xe5   :  { %v925_v2 = vpop.f32.mrf.mxu0 }
  0xe6   :  { %v947_v3 = vpop.f32.mrf.mxu1  ;;  %v926_v4 = vadd.f32 %v925_v2, %v924_v63 }
  0xe7   :  { %v927_v5 = vpop.f32.mrf.mxu0  ;;  %v948_v8 = vadd.f32 %v947_v3, %v946_v0 }
  0xe8   :  { %v949_v6 = vpop.f32.mrf.mxu1  ;;  %v341_v7 = vadd.f32 %v926_v4, %v829_v1 }
  0xe9   :  { %v928_v10 = vpop.f32.mrf.mxu0 }
  0xea   :  { %v950_v11 = vpop.f32.mrf.mxu1  ;;  %v381_v12 = vadd.f32 %v948_v8, %v341_v7 }
  0xec   :  { %v452_v15 = vpack.c.bf16 %v381_v12, %v381_v12 }
  0xee   :  { %1010 = vmatmul.mubr.msk.bf16.vlgmr.msra.gmra.mxu0 %vm485_vm1, %v452_v15 }
  0xef   :  { %980 = vmatpush3.bf16.msra.mxu0 %v1074_v13  ;;  %807 = vmatprep.mubr.bf16.mxu0 %v874_v14 }
  0xf0   :  { %981 = vmatprep.subr.bf16.mxu0 %v1075_v16 }
  0xf3   :  { %982 = vmatpush3.bf16.msra.mxu0 %v1076_v17 }
  0xf4   :  { %983 = vmatprep.subr.bf16.mxu0 %v1077_v18 }
  0xf7   :  { %984 = vmatpush3.bf16.msra.mxu0 %v1078_v19 }
  0xf8   :  { %985 = vmatprep.subr.bf16.mxu0 %v1079_v20 }
  0xfb   :  { %986 = vmatpush3.bf16.msra.mxu0 %v1080_v21 }
  0xfc   :  { %987 = vmatprep.subr.bf16.mxu0 %v1081_v22 }
  0xff   :  { %988 = vmatpush3.bf16.msra.mxu0 %v1082_v23 }
 0x100   :  { %989 = vmatprep.subr.bf16.mxu0 %v1083_v24 }
 0x103   :  { %990 = vmatpush3.bf16.msra.mxu0 %v1084_v25 }
 0x104   :  { %991 = vmatprep.subr.bf16.mxu0 %v1085_v26  ;;  %v973_v31 = vpop.f32.mrf.mxu1 }
 0x106   :  { %v974_v32 = vpop.f32.mrf.mxu1 }
 0x107   :  { %992 = vmatpush3.bf16.msra.mxu0 %v1086_v27  ;;  %v975_v33 = vadd.f32 %v974_v32, %v973_v31 }
 0x108   :  { %993 = vmatprep.subr.bf16.mxu0 %v1087_v28  ;;  %v976_v34 = vpop.f32.mrf.mxu1 }
 0x10a   :  { %v977_v35 = vpop.f32.mrf.mxu1 }
 0x10b   :  { %994 = vmatpush3.bf16.msra.mxu0 %v1088_v29 }
 0x10e   :  { %808 = vmatmul.mubr.bf16.vlgmr.msra.gmra.mxu0 %v873_v30 }
 0x1ae   :  { %v523_v36 = vpop.f32.mrf.mxu0 }
 0x1af   :  { %v770_v42 = vadd.f32 %v975_v33, %v523_v36 }
 0x1b0   :  { %v1011_v37 = vpop.f32.mrf.mxu0 }
 0x1b2   :  { %v526_v38 = vpop.f32.mrf.mxu0 }
 0x1b4   :  { %v1012_v39 = vpop.f32.mrf.mxu0 }
 0x1ce   :  { %v995_v40 = vpop.f32.mrf.mxu0 }
 0x1d0   :  { %v996_v41 = vpop.f32.mrf.mxu0 }
 0x1d1   :  { %v997_v43 = vadd.f32 %v996_v41, %v995_v40 }
 0x1d2   :  { %v998_v45 = vpop.f32.mrf.mxu0 }
 0x1d3   :  { %v810_v46 = vadd.f32 %v997_v43, %v770_v42 }
 0x1d4   :  { %v999_v47 = vpop.f32.mrf.mxu0 }
 0x1d5   :  { %v822_v48 = vadd.f32 %v907_v44, %v810_v46 }
 0x1d7   :  { %1091 = vtanh.f32 %v822_v48 }
 0x1e4   :  { %v1092_v49 = vpop.eup %1091 }
 0x1e5   :  { %824 = vst [vmem:[%s1367_s7] sm:$0xff] %v1092_v49 }

</bundles_post_ra>
